<compile_context>
chip_gen: v5e
topology: v5e:2x2
jax: 0.10.0
libtpu: 0.0.40
codegen_flags: <defaults>
</compile_context>

<pallas_src>
import jax
import jax.numpy as jnp
from jax.experimental import pallas as pl
from jax.experimental.pallas import tpu as pltpu


_LANES = 1024                          # lane-dense last dim (multiple of 128 -> unmasked vst)
_TM = 1024                             # rows per tile: 1024*1024*4B = 4 MiB per buffer
_VMEM_LIMIT_BYTES = 32 * 1024 * 1024   # explicit scoped VMEM: 16 MiB of buffers + headroom, all gens
_MIN_PALLAS_ELEMENTS = 4 * 1024 * 1024 # below this, XLA's fused elementwise is already at roofline


def _linreg_kernel(w_ref, b_ref, x_ref, o_ref):
    # w_ref / b_ref: (1,) float32 scalars in SMEM.  x_ref / o_ref: (tm, lanes) VMEM tiles.
    # One load, one fma, one (explicitly cast) store per vreg — the kernel is
    # purely HBM/DMA bound; VALU/vld/vst slots all have huge slack.
    w = w_ref[0]
    b = b_ref[0]
    o_ref[...] = (w * x_ref[...] + b).astype(o_ref.dtype)


def _round_up(a: int, b: int) -> int:
    return ((a + b - 1) // b) * b


def _pallas_fma_2d(x2d: jax.Array, w32: jax.Array, b32: jax.Array) -> jax.Array:
    """Tiled y = w * x + b over a (rows, lanes) slab; lanes is a multiple of 128."""
    rows, lanes = x2d.shape

    # Rows per tile: multiple of 8 (or the full extent), capped at _TM, and
    # chosen so there are >=2 tiles whenever possible (lets v7x shard the grid
    # across both TensorCores; a 1-tile grid would leave one TC idle).
    tm = min(_TM, _round_up(pl.cdiv(rows, 2), 8))
    if tm > rows:
        tm = rows                      # full-extent block is always legal
    grid = (pl.cdiv(rows, tm),)        # ragged last tile -> Pallas masks OOB writes

    return pl.pallas_call(
        _linreg_kernel,
        out_shape=jax.ShapeDtypeStruct((rows, lanes), x2d.dtype),
        grid=grid,
        in_specs=[
            pl.BlockSpec(memory_space=pltpu.SMEM),        # weights (1,) f32 scalar
            pl.BlockSpec(memory_space=pltpu.SMEM),        # bias    (1,) f32 scalar
            # Optional knob (sweep on HW): pipeline_mode=pl.Buffered(3) on this spec.
            pl.BlockSpec((tm, lanes), lambda i: (i, 0)),  # x tile (auto double-buffered)
        ],
        out_specs=pl.BlockSpec((tm, lanes), lambda i: (i, 0)),
        compiler_params=pltpu.CompilerParams(
            dimension_semantics=("parallel",),            # shard tiles across v7x's 2 TCs
            vmem_limit_bytes=_VMEM_LIMIT_BYTES,           # deterministic across v5e/v6e/v7x
        ),
    )(w32, b32, x2d)


def linear_regression_forward(
    x: jax.Array,
    weights: jax.Array,
    bias: jax.Array,
    *,
    min_pallas_elements: int = _MIN_PALLAS_ELEMENTS,
) -> jax.Array:
    """y = weights * x + bias, with weights/bias of shape (1,)."""
    assert weights.shape == (1,) and bias.shape == (1,)
    n = x.size
    if n < min_pallas_elements:
        # XLA's fused w*x+b already runs at HBM roofline with zero wrapper overhead.
        return weights * x + bias

    w32 = weights.astype(jnp.float32)
    b32 = bias.astype(jnp.float32)

    orig_shape = x.shape
    flat = x.reshape(-1)                               # free for contiguous layouts
    lanes = _LANES if n >= _LANES else 128
    rows = n // lanes
    if rows == 0:
        return weights * x + bias

    n_main = rows * lanes
    x2d = flat[:n_main].reshape(rows, lanes)           # pure reshape when n % lanes == 0
    y_main = _pallas_fma_2d(x2d, w32, b32).reshape(-1)

    if n_main == n:
        return y_main.reshape(orig_shape)

    # Sub-lane remainder (< lanes elements): plain JAX instead of padding the full array.
    tail = flat[n_main:]
    y_tail = (w32[0] * tail + b32[0]).astype(x.dtype)
    return jnp.concatenate([y_main, y_tail]).reshape(orig_shape)


if __name__ == "__main__":
    key = jax.random.PRNGKey(0)
    k_w, k_b, k_x1, k_x2, k_x3 = jax.random.split(key, 5)

    # Deterministic "randn"-style parameter init (matches torch.randn(1) shapes).
    weights = jax.random.normal(k_w, (1,), dtype=jnp.float32)
    bias = jax.random.normal(k_b, (1,), dtype=jnp.float32)

    # 1) Tiny tutorial-sized (N, 1) input: dispatches to plain JAX (size guard).
    x_tiny = jax.random.normal(k_x1, (8, 1), dtype=jnp.float32)
    y_tiny = jax.block_until_ready(linear_regression_forward(x_tiny, weights, bias))
    assert y_tiny.shape == x_tiny.shape and y_tiny.dtype == x_tiny.dtype
    assert jnp.allclose(y_tiny, weights * x_tiny + bias, atol=1e-6, rtol=1e-6)

    # 2) Lane-multiple (N, 1) input forced through the Pallas kernel (no tail, pure reshape).
    x_even = jax.random.normal(k_x2, (4096, 1), dtype=jnp.float32)
    y_even = jax.block_until_ready(
        linear_regression_forward(x_even, weights, bias, min_pallas_elements=0)
    )
    assert y_even.shape == x_even.shape and y_even.dtype == x_even.dtype
    assert jnp.allclose(y_even, weights * x_even + bias, atol=1e-6, rtol=1e-6)

    # 3) Ragged (N, 1) input forced through the Pallas kernel: exercises the
    #    partial-last-block masking and the plain-JAX sub-lane tail path.
    x_ragged = jax.random.normal(k_x3, (3000, 1), dtype=jnp.float32)
    y_ragged = jax.block_until_ready(
        linear_regression_forward(x_ragged, weights, bias, min_pallas_elements=0)
    )
    assert y_ragged.shape == x_ragged.shape and y_ragged.dtype == x_ragged.dtype
    assert jnp.allclose(y_ragged, weights * x_ragged + bias, atol=1e-6, rtol=1e-6)

    print("KERNEL_OK")
</pallas_src>

<mosaic_0001>
module attributes {stable_mosaic.version = 11 : i64} {
  func.func @_linreg_kernel(%arg0: i32, %arg1: memref<1xf32, #tpu.memory_space<smem>>, %arg2: memref<1xf32, #tpu.memory_space<smem>>, %arg3: memref<4x1024xf32, #tpu.memory_space<vmem>>, %arg4: memref<4x1024xf32, #tpu.memory_space<vmem>>) attributes {dimension_semantics = [#tpu.dimension_semantics<parallel>], iteration_bounds = array<i64: 1>, scalar_prefetch = 0 : i64, scratch_operands = 0 : i64, tpu.core_type = #tpu.core_type<tc>, window_params = [{transform_indices = @transform_0, window_bounds = array<i64: 1>}, {transform_indices = @transform_1, window_bounds = array<i64: 1>}, {transform_indices = @transform_2, window_bounds = array<i64: 4, 1024>}, {transform_indices = @transform_3, window_bounds = array<i64: 4, 1024>}]} {
    %c0 = arith.constant 0 : index
    %0 = memref.load %arg1[%c0] : memref<1xf32, #tpu.memory_space<smem>>
    %c0_0 = arith.constant 0 : index
    %1 = memref.load %arg2[%c0_0] : memref<1xf32, #tpu.memory_space<smem>>
    %c0_1 = arith.constant 0 : index
    %c0_2 = arith.constant 0 : index
    %2 = vector.load %arg3[%c0_1, %c0_2] : memref<4x1024xf32, #tpu.memory_space<vmem>>, vector<4x1024xf32>
    %3 = vector.broadcast %0 : f32 to vector<4x1024xf32>
    %4 = arith.mulf %3, %2 : vector<4x1024xf32>
    %5 = vector.broadcast %1 : f32 to vector<4x1024xf32>
    %6 = arith.addf %4, %5 : vector<4x1024xf32>
    %c0_3 = arith.constant 0 : index
    %c0_4 = arith.constant 0 : index
    %7 = vector.load %arg4[%c0_3, %c0_4] : memref<4x1024xf32, #tpu.memory_space<vmem>>, vector<4x1024xf32>
    tpu.vector_store %arg4[%c0_3, %c0_4], %6 {strides = array<i32>} : memref<4x1024xf32, #tpu.memory_space<vmem>>, vector<4x1024xf32>,
    return
  }
  func.func @transform_0(%arg0: i32) -> i32 {
    %c0_i32 = arith.constant 0 : i32
    %c0_i32_0 = arith.constant 0 : i32
    return %c0_i32 : i32
  }
  func.func @transform_1(%arg0: i32) -> i32 {
    %c0_i32 = arith.constant 0 : i32
    %c0_i32_0 = arith.constant 0 : i32
    return %c0_i32 : i32
  }
  func.func @transform_2(%arg0: i32) -> (i32, i32) {
    %c0_i32 = arith.constant 0 : i32
    %c0_i32_0 = arith.constant 0 : i32
    return %arg0, %c0_i32 : i32, i32
  }
  func.func @transform_3(%arg0: i32) -> (i32, i32) {
    %c0_i32 = arith.constant 0 : i32
    %c0_i32_0 = arith.constant 0 : i32
    return %arg0, %c0_i32 : i32, i32
  }
}

</mosaic_0001>

<bundles_post_ra>
// kernel: tpu_custom_call.1
= control target key start
LH: loop header
LB: loop body
LE: loop exit
PB: predicated region body
PF: predicated region fallthrough
CT: control target
= control target key end

     0   :  { %10 = vsyncpa [#allocation5], 0  ;;  %s156_s0 = inlined_call_operand.<no memory space> [shape: f32[1], index: 0, kind: input, shape index: {}]   ;;  %s157_s1 = inlined_call_operand.<no memory space> [shape: f32[1], index: 1, kind: input, shape index: {}]   ;;  %s158_s2 = inlined_call_operand.hbm [shape: f32[4,1024], index: 2, kind: input, shape index: {}]   ;;  %s159_s3 = inlined_call_operand.hbm [shape: f32[4,1024], index: 3, kind: output, shape index: {}]  }
   0x1   :  { %11 = vsyncpa [#allocation6], 0  ;;  %s21_s14 = sshll.u32 %s158_s2, 4  ;;  %s122_s15 = smov [#allocation4]   ;;  %s22_s14 = int_to_ptr.hbm [resolvable:$true] %s21_s14 }
   0x2   :  { %s23_s16 = sshll.u32 %s122_s15, 4  ;;  %s24_s16 = int_to_ptr.vmem [resolvable:$true] %s23_s16 }
   0x3   :  { %26 = dma.hbm_to_vmem [thread:$0]  %s22_s14, 512, %s24_s16, [#allocation5]  }
   0x4   :  { %118 = dma.done.wait [#allocation5], 512  }
   0x5   :  { %119 = vsyncadd [#allocation5], 4294966784  ;;  %v37_v0 = vstv %s156_s0  ;;  %v33_v1 = vld [vmem:[#allocation4] sm:$0xff]  ;;  %v42_v2 = vstv %s157_s1  ;;  %v34_v3 = vld [vmem:[#allocation4 + $0x8] sm:$0xff]  ;;  %s123_s2 = smov [#allocation7]   ;;  %s58_s0 = sshll.u32 %s159_s3, 4  ;;  %s59_s0 = int_to_ptr.hbm [resolvable:$true] %s58_s0 }
   0x6   :  { %v35_v4 = vld [vmem:[#allocation4 + $0x10] sm:$0xff]  ;;  %v38_v5 = vmul.f32 %v37_v0, %v33_v1  ;;  %v39_v6 = vmul.f32 %v37_v0, %v34_v3  ;;  %v36_v8 = vld [vmem:[#allocation4 + $0x18] sm:$0xff]  ;;  %s56_s21 = sshll.u32 %s123_s2, 4  ;;  %s57_s21 = int_to_ptr.vmem [resolvable:$true] %s56_s21 }
   0x7   :  { %v40_v7 = vmul.f32 %v37_v0, %v35_v4  ;;  %v41_v9 = vmul.f32 %v37_v0, %v36_v8 }
   0x8   :  { %v43_v10 = vadd.f32 %v42_v2, %v38_v5  ;;  %v44_v11 = vadd.f32 %v42_v2, %v39_v6 }
   0x9   :  { %v45_v12 = vadd.f32 %v42_v2, %v40_v7  ;;  %v46_v13 = vadd.f32 %v42_v2, %v41_v9 }
   0xa   :  { %47 = vst [vmem:[#allocation7] sm:$0xff] %v43_v10 }
   0xb   :  { %48 = vst [vmem:[#allocation7 + $0x8] sm:$0xff] %v44_v11 }
   0xc   :  { %49 = vst [vmem:[#allocation7 + $0x10] sm:$0xff] %v45_v12 }
   0xd   :  { %50 = vst [vmem:[#allocation7 + $0x18] sm:$0xff] %v46_v13 }
   0xe   :  { %61 = dma.vmem_to_hbm [thread:$0]  %s57_s21, 512, %s59_s0, [#allocation6]  }
   0xf   :  { %120 = dma.done.wait [#allocation6], 512  }
  0x10   :  { %121 = vsyncadd [#allocation6], 4294966784 }
  0x11   :  { %66 = vsyncpa [#allocation5], 1 }
  0x12   :  { %67 = vsyncpa [#allocation6], 1 }

</bundles_post_ra>
